<compile_context>
chip_gen: v7x
topology: tpu7x:2x2x1
jax: 0.10.0
libtpu: 0.0.40
codegen_flags: <defaults>
</compile_context>

<pallas_src>
from typing import Any, Callable

import jax
import jax.numpy as jnp
from jax.experimental import pallas as pl
from jax.experimental.pallas import tpu as pltpu


def _round_up(x: int, m: int) -> int:
    return (x + m - 1) // m * m


# ----------------------------------------------------------------------------
# Kernel 1: channel projection + softmax, NCHW-native, lane-dense output
# ----------------------------------------------------------------------------
def _proj_softmax_kernel(pt_ref, x_ref, o_ref):
    # pt_ref: (C_out, C) bf16   x_ref: (1, C, TILE) f32   o_ref: (1, C_out, TILE)
    x = x_ref[0].astype(jnp.bfloat16)                       # bf16 MXU operands,
    y = jnp.dot(pt_ref[...], x,                             # f32 accumulation
                preferred_element_type=jnp.float32)         # (C_out, TILE)
    y = y - jnp.max(y, axis=0, keepdims=True)               # channel (sublane) reduce
    e = jnp.exp(y)
    # TODO(synk): if bundle dumps show the XLU as the binding slot, compute this
    # sum as ones((1, C_out)) @ e on the MXU (it has large slack here).
    denom = jnp.sum(e, axis=0, keepdims=True)                # (1, TILE)
    o_ref[0] = (e * pl.reciprocal(denom, approx=False)).astype(o_ref.dtype)


def _choose_pixel_tile(hw_padded: int, max_tile: int) -> int:
    """Largest multiple of 128 <= max_tile dividing hw_padded (hw_padded % 128 == 0)."""
    tile = min(max_tile, hw_padded)
    tile -= tile % 128
    while hw_padded % tile != 0:
        tile -= 128
    return tile


def projection_softmax_postprocess(pred_nchw: jax.Array,
                                   projection_matrix: jax.Array,
                                   *, max_pix_tile: int = 32768) -> jax.Array:
    """pred_nchw: (B, C, H, W); projection_matrix: (C, C_OUT).

    Returns softmax over projected channels, shape (B, C_OUT, H, W).
    """
    B, C, H, W = pred_nchw.shape
    C_out = projection_matrix.shape[1]
    HW = H * W
    HW_p = _round_up(HW, 128)                 # pad pixels instead of full-extent blocks

    x = pred_nchw.reshape(B, C, HW)           # free view (no NCHW<->NHWC transpose)
    if HW_p != HW:
        x = jnp.pad(x, ((0, 0), (0, 0), (0, HW_p - HW)))
    proj_t = projection_matrix.T.astype(jnp.bfloat16)        # tiny, one-time

    tile = _choose_pixel_tile(HW_p, max_pix_tile)
    n_tiles = HW_p // tile

    out = pl.pallas_call(
        _proj_softmax_kernel,
        out_shape=jax.ShapeDtypeStruct((B, C_out, HW_p), pred_nchw.dtype),
        grid_spec=pltpu.PrefetchScalarGridSpec(
            num_scalar_prefetch=0,
            grid=(B, n_tiles),
            in_specs=[
                pl.BlockSpec((C_out, C), lambda b, p: (0, 0)),
                pl.BlockSpec((1, C, tile), lambda b, p: (b, 0, p)),
            ],
            out_specs=pl.BlockSpec((1, C_out, tile), lambda b, p: (b, 0, p)),
        ),
        compiler_params=pltpu.CompilerParams(
            dimension_semantics=("parallel", "parallel"),
            vmem_limit_bytes=32 * 1024 * 1024),
    )(proj_t, x)

    if HW_p != HW:
        out = out[:, :, :HW]
    return out.reshape(B, C_out, H, W)        # free view


# ----------------------------------------------------------------------------
# Kernel 2: tiled, lane-dense elementwise sigmoid (depth head, large inputs)
# ----------------------------------------------------------------------------
def _sigmoid_kernel(x_ref, o_ref):
    x = x_ref[...].astype(jnp.float32)
    e = jnp.exp(-jnp.abs(x))                                  # stable: safe side only
    num = jnp.where(x >= 0, 1.0, e)
    o_ref[...] = (num * pl.reciprocal(1.0 + e, approx=False)).astype(o_ref.dtype)


_SIGMOID_LANE = 1024


def sigmoid_postprocess(pred: jax.Array,
                        projection_matrix: jax.Array | None = None,
                        *, min_pallas_bytes: int = 2 << 20,
                        max_rows_per_tile: int = 512,
                        force_pallas: bool = False) -> jax.Array:
    """Elementwise sigmoid.  projection_matrix is unused for this task."""
    del projection_matrix
    nbytes = pred.size * pred.dtype.itemsize
    if not force_pallas and nbytes < min_pallas_bytes:
        # Tiny head: a standalone pallas_call is 100% launch/pipeline overhead.
        return jax.nn.sigmoid(pred)

    total = pred.size
    rows = _round_up(pl.cdiv(total, _SIGMOID_LANE), 8)        # rows % 8 == 0
    rt = min(max_rows_per_tile, rows)
    rt -= rt % 8
    while rows % rt != 0:                                     # largest 8-multiple divisor
        rt -= 8

    flat = pred.reshape(-1)
    padded = rows * _SIGMOID_LANE
    if padded != total:
        flat = jnp.pad(flat, (0, padded - total))
    x = flat.reshape(rows, _SIGMOID_LANE)                     # lane-dense (1024)

    out = pl.pallas_call(
        _sigmoid_kernel,
        out_shape=jax.ShapeDtypeStruct(x.shape, pred.dtype),
        grid_spec=pltpu.PrefetchScalarGridSpec(
            num_scalar_prefetch=0,
            grid=(rows // rt,),
            in_specs=[pl.BlockSpec((rt, _SIGMOID_LANE), lambda i: (i, 0))],
            out_specs=pl.BlockSpec((rt, _SIGMOID_LANE), lambda i: (i, 0)),
        ),
        compiler_params=pltpu.CompilerParams(
            dimension_semantics=("parallel",),
            vmem_limit_bytes=32 * 1024 * 1024),
    )(x)
    return out.reshape(-1)[:total].reshape(pred.shape)


# ----------------------------------------------------------------------------
# PredictionPostprocessor (JAX/Pallas port of the PyTorch dispatcher)
# ----------------------------------------------------------------------------
class PredictionPostprocessor:
    def __init__(self, per_task_postprocessing_funcs: dict[str, Callable[..., Any]]):
        self.per_task_postprocessing_funcs = per_task_postprocessing_funcs

    def __call__(self,
                 per_task_prediction: dict[str, jax.Array],
                 projection_matrix: jax.Array | None = None) -> dict[str, jax.Array]:
        processed = {}
        for task, fn in self.per_task_postprocessing_funcs.items():
            processed[task] = fn(per_task_prediction[task], projection_matrix)
        return processed


# ----------------------------------------------------------------------------
# Pure-JAX references for correctness checking
# ----------------------------------------------------------------------------
def _ref_proj_softmax(pred_nchw, projection_matrix):
    x = jnp.transpose(pred_nchw, (0, 2, 3, 1))                # B,H,W,C
    y = jnp.einsum("bhwc,ck->bhwk", x, projection_matrix,
                   precision=jax.lax.Precision.HIGHEST)
    y = jax.nn.softmax(y, axis=-1)
    return jnp.transpose(y, (0, 3, 1, 2))


if __name__ == "__main__":
    key = jax.random.PRNGKey(0)
    k1, k2, k3 = jax.random.split(key, 3)

    B, C, H, W = 2, 16, 16, 16        # "semantic" head: 16 raw channels
    C_OUT = 16                        # projected class count

    per_task_prediction = {
        "semantic": jax.random.normal(k1, (B, C, H, W), dtype=jnp.float32),
        "depth":    jax.random.normal(k2, (B, 1, H, W), dtype=jnp.float32),
    }
    # Deterministic synthetic projection matrix (no checkpoint load).
    projection_matrix = jax.random.normal(k3, (C, C_OUT), dtype=jnp.float32) * 0.1

    postprocessor = PredictionPostprocessor({
        "semantic": projection_softmax_postprocess,
        "depth":    sigmoid_postprocess,
    })

    # Fuse the whole dispatcher under one jit so both heads share one XLA program.
    run = jax.jit(lambda preds, pm: postprocessor(preds, pm))
    out = run(per_task_prediction, projection_matrix)
    out = jax.tree_util.tree_map(jax.block_until_ready, out)

    ref_sem = _ref_proj_softmax(per_task_prediction["semantic"], projection_matrix)
    ref_dep = jax.nn.sigmoid(per_task_prediction["depth"])
    assert out["semantic"].shape == (B, C_OUT, H, W)
    assert out["depth"].shape == (B, 1, H, W)
    # bf16 MXU operands (f32 accumulation) => ~1e-3-scale deviation vs f32 reference.
    assert jnp.allclose(out["semantic"], ref_sem, atol=2e-3, rtol=2e-3)
    assert jnp.allclose(out["depth"], ref_dep, atol=1e-5, rtol=1e-5)

    # Also exercise the Pallas sigmoid path (exact reciprocal, padded lane layout).
    dep_pallas = jax.block_until_ready(
        sigmoid_postprocess(per_task_prediction["depth"], None, force_pallas=True))
    assert jnp.allclose(dep_pallas, ref_dep, atol=1e-4, rtol=1e-4)

    # And the pixel-padding path of the semantic head (HW not a multiple of 128).
    pred_odd = jax.random.normal(k1, (1, C, 10, 10), dtype=jnp.float32)
    sem_odd = jax.block_until_ready(
        projection_softmax_postprocess(pred_odd, projection_matrix))
    assert sem_odd.shape == (1, C_OUT, 10, 10)
    assert jnp.allclose(sem_odd, _ref_proj_softmax(pred_odd, projection_matrix),
                        atol=2e-3, rtol=2e-3)

    print("KERNEL_OK")
</pallas_src>

<mosaic_0001>
module attributes {stable_mosaic.version = 11 : i64} {
  func.func @_proj_softmax_kernel(%arg0: i32, %arg1: i32, %arg2: memref<16x16xbf16, #tpu.memory_space<vmem>>, %arg3: memref<1x16x256xf32, #tpu.memory_space<vmem>>, %arg4: memref<1x16x256xf32, #tpu.memory_space<vmem>>) attributes {dimension_semantics = [#tpu.dimension_semantics<parallel>, #tpu.dimension_semantics<parallel>], iteration_bounds = array<i64: 2, 1>, scalar_prefetch = 0 : i64, scratch_operands = 0 : i64, tpu.core_type = #tpu.core_type<tc>, window_params = [{pipeline_mode = #tpu.pipeline_mode<synchronous>, transform_indices = @transform_0, window_bounds = array<i64: 16, 16>}, {transform_indices = @transform_1, window_bounds = array<i64: 1, 16, 256>}, {transform_indices = @transform_2, window_bounds = array<i64: 1, 16, 256>}]} {
    %c0 = arith.constant 0 : index
    %c0_0 = arith.constant 0 : index
    %c0_1 = arith.constant 0 : index
    %0 = vector.load %arg3[%c0, %c0_0, %c0_1] : memref<1x16x256xf32, #tpu.memory_space<vmem>>, vector<1x16x256xf32>
    %1 = vector.shape_cast %0 : vector<1x16x256xf32> to vector<16x256xf32>
    %2 = arith.truncf %1 : vector<16x256xf32> to vector<16x256xbf16>
    %c0_2 = arith.constant 0 : index
    %c0_3 = arith.constant 0 : index
    %3 = vector.load %arg2[%c0_2, %c0_3] : memref<16x16xbf16, #tpu.memory_space<vmem>>, vector<16x16xbf16>
    %cst = arith.constant dense<0.000000e+00> : vector<16x256xf32>
    %4 = tpu.matmul %3, %2, %cst {dimension_numbers = #tpu.dot_dimension_numbers<[1], [0], [0], [1], [0, 0, 1, 1], [], []>} : vector<16x16xbf16>, vector<16x256xbf16>, vector<16x256xf32> -> vector<16x256xf32>
    %cst_4 = arith.constant dense<0xFF800000> : vector<256xf32>
    %5 = vector.multi_reduction <maximumf>, %4, %cst_4 [0] : vector<16x256xf32> to vector<256xf32>
    %6 = vector.shape_cast %5 : vector<256xf32> to vector<1x256xf32>
    %7 = vector.broadcast %6 : vector<1x256xf32> to vector<16x256xf32>
    %8 = arith.subf %4, %7 : vector<16x256xf32>
    %9 = math.exp %8 : vector<16x256xf32>
    %cst_5 = arith.constant dense<0.000000e+00> : vector<256xf32>
    %10 = vector.multi_reduction <add>, %9, %cst_5 [0] : vector<16x256xf32> to vector<256xf32>
    %11 = vector.shape_cast %10 : vector<256xf32> to vector<1x256xf32>
    %12 = tpu.reciprocal %11 : vector<1x256xf32> -> vector<1x256xf32>
    %13 = vector.broadcast %12 : vector<1x256xf32> to vector<16x256xf32>
    %14 = arith.mulf %9, %13 : vector<16x256xf32>
    %c0_6 = arith.constant 0 : index
    %c0_7 = arith.constant 0 : index
    %c0_8 = arith.constant 0 : index
    %15 = vector.load %arg4[%c0_6, %c0_7, %c0_8] : memref<1x16x256xf32, #tpu.memory_space<vmem>>, vector<1x16x256xf32>
    %16 = vector.shape_cast %15 : vector<1x16x256xf32> to vector<16x256xf32>
    %17 = vector.shape_cast %14 : vector<16x256xf32> to vector<1x16x256xf32>
    tpu.vector_store %arg4[%c0_6, %c0_7, %c0_8], %17 {strides = array<i32>} : memref<1x16x256xf32, #tpu.memory_space<vmem>>, vector<1x16x256xf32>,
    return
  }
  func.func @transform_0(%arg0: i32, %arg1: i32) -> (i32, i32) {
    %c0_i32 = arith.constant 0 : i32
    %c0_i32_0 = arith.constant 0 : i32
    %c0_i32_1 = arith.constant 0 : i32
    return %c0_i32, %c0_i32_0 : i32, i32
  }
  func.func @transform_1(%arg0: i32, %arg1: i32) -> (i32, i32, i32) {
    %c0_i32 = arith.constant 0 : i32
    %c0_i32_0 = arith.constant 0 : i32
    return %arg0, %c0_i32, %arg1 : i32, i32, i32
  }
  func.func @transform_2(%arg0: i32, %arg1: i32) -> (i32, i32, i32) {
    %c0_i32 = arith.constant 0 : i32
    %c0_i32_0 = arith.constant 0 : i32
    return %arg0, %c0_i32, %arg1 : i32, i32, i32
  }
}

</mosaic_0001>

<bundles_post_ra>
// kernel: _lambda_.1
= control target key start
LH: loop header
LB: loop body
LE: loop exit
PB: predicated region body
PF: predicated region fallthrough
CT: control target
= control target key end

     0   :  { %s474_s9 = smov 0   ;;  %s476_s10 = smov 0   ;;  %s517_s0 = inlined_call_operand.vmem [shape: bf16[16,16], index: 0, kind: input, shape index: {}]   ;;  %s518_s1 = inlined_call_operand.vmem [shape: f32[2,16,256], index: 1, kind: input, shape index: {}]   ;;  %s519_s2 = inlined_call_operand.vmem [shape: f32[2,16,256], index: 2, kind: output, shape index: {}]  }
   0x1   :  { %s478_s11 = smov 0  }
   0x2 LB: > { %s24_s12 = sadd.s32 1, %s452_s10  ;;  %p385_p0 = scmp.ge.s32.totalorder %s456_s11, 1  ;;  %s456_s11 = sphi %s478_s11, %s12_s11   ;;  %s452_s10 = sphi %s476_s10, %s521_s10   ;;  %s448_s9 = sphi %s474_s9, %s520_s9  }
   0x3   : > { %p26_p1 = scmp.ge.s32.totalorder %s24_s12, 2  ;;  %p133_p2 = scmp.lt.s32.totalorder %s456_s11, 3 }
   0x5   : > { %s523_s12 = smov (%p26_p1, %s24_s12), 0  ;;  %p134_p3 = pnand %p385_p0, %p133_p2 }
   0x6   : > { %p164_p4 = scmp.lt.s32.totalorder (!%p134_p3), %s448_s9, 1  ;;  %v458_v0 = vmov (!%p134_p3), 0   ;;  %v421_v7 = vld [vmem:[%s517_s0] sm:$0xff] (!%p134_p3)   ;;  %vm197_vm0 = vcmask (!%p134_p3), 130048  }
   0x7   : > { %137 = sbr.rel (%p134_p3) target bundleno = 298 (0x12a), region = 28  ;;  %233 = vmatprep.mubr.bf16.mxu0 (!%p134_p3), %v458_v0 }
   0xe   : > { %s525_s9 = smov (!%p164_p4, %s448_s9), 1 }
   0xf   : > { %s394_s13 = sshll.u32 %s525_s9, 5 }
  0x10   : > { %s171_s16 = scalar_lea.vmem %s518_s1, %s394_s13  ;;  %s181_s21 = scalar_lea.vmem %s519_s2, %s394_s13 }
  0x11   : > { %v185_v1 = vld [vmem:[%s171_s16 + $0x8] sm:$0xff]  ;;  %v187_v2 = vld [vmem:[%s171_s16 + $0x18] sm:$0xff]  ;;  %v184_v3 = vld [vmem:[%s171_s16] sm:$0xff] }
  0x12   : > { %v189_v4 = vpack.c.bf16 %v187_v2, %v185_v1  ;;  %v186_v5 = vld [vmem:[%s171_s16 + $0x10] sm:$0xff] }
  0x13   : > { %v188_v6 = vpack.c.bf16 %v186_v5, %v184_v3 }
  0x14   : > { %201 = vmatprep.subr.bf16.mxu0 %v189_v4 }
  0x15   : > { %202 = vmatpush1.bf16.msra.mxu0 %v188_v6 }
  0x18   : > { %391 = vmatmul.mubr.msk.bf16.vlgmr.msra.gmra.mrb[0].mxu0 %vm197_vm0, %v421_v7 }
  0xeb   : > { %v235_v8 = vpop.f32.mrb[0].mxu0 }
  0xec   : > { %v237_v9 = vpop.f32.mrb[1].mxu0 }
  0xed   : > { %v239_v10 = vpop.f32.mrb[2].mxu0 }
  0xee   : > { %v244_v11 = vmax.f32 %v235_v8, %v239_v10  ;;  %v241_v12 = vpop.f32.mrb[3].mxu0 }
  0xef   : > { %v251_v13 = vmax.f32 %v237_v9, %v241_v12 }
  0xf0   : > { %v245_v14 = vrot.slane %v244_v11, 4 }
  0xf1   : > { %v252_v15 = vrot.slane %v251_v13, 4 }
  0xf2   : > { %v246_v16 = vmax.f32 %v244_v11, %v245_v14 }
  0xf3   : > { %v253_v17 = vmax.f32 %v251_v13, %v252_v15 }
  0xf4   : > { %v247_v18 = vrot.slane %v246_v16, 2 }
  0xf5   : > { %v254_v19 = vrot.slane %v253_v17, 2 }
  0xf6   : > { %v248_v20 = vmax.f32 %v246_v16, %v247_v18 }
  0xf7   : > { %v255_v21 = vmax.f32 %v253_v17, %v254_v19 }
  0xf8   : > { %v249_v22 = vrot.slane %v248_v20, 1 }
  0xf9   : > { %v256_v23 = vrot.slane %v255_v21, 1 }
  0xfa   : > { %v250_v24 = vmax.f32 %v248_v20, %v249_v22 }
  0xfb   : > { %v257_v25 = vmax.f32 %v255_v21, %v256_v23 }
  0xfc   : > { %v258_v26 = vsub.f32 %v235_v8, %v250_v24  ;;  %v260_v27 = vsub.f32 %v239_v10, %v250_v24 }
  0xfd   : > { %v259_v28 = vsub.f32 %v237_v9, %v257_v25  ;;  %v261_v29 = vsub.f32 %v241_v12, %v257_v25 }
  0xfe   : > { %v262_v30 = vmul.f32 1.442695, %v258_v26  ;;  %v266_v31 = vmul.f32 1.442695, %v260_v27 }
  0xff   : > { %v264_v32 = vmul.f32 1.442695, %v259_v28  ;;  %v268_v33 = vmul.f32 1.442695, %v261_v29 }
 0x100   : > { %422 = vpow2.f32 %v262_v30 }
 0x101   : > { %424 = vpow2.f32 %v266_v31 }
 0x102   : > { %426 = vpow2.f32 %v264_v32 }
 0x103   : > { %428 = vpow2.f32 %v268_v33 }
 0x10a   : > { %v423_v34 = vpop.eup %422 }
 0x10b   : > { %v425_v35 = vpop.eup %424 }
 0x10c   : > { %v427_v36 = vpop.eup %426  ;;  %v270_v37 = vadd.f32 %v425_v35, %v423_v34 }
 0x10d   : > { %v429_v38 = vpop.eup %428 }
 0x10e   : > { %v271_v39 = vrot.slane %v270_v37, 4  ;;  %v277_v40 = vadd.f32 %v429_v38, %v427_v36 }
 0x110   : > { %v272_v41 = vadd.f32 %v271_v39, %v270_v37  ;;  %v278_v42 = vrot.slane %v277_v40, 4 }
 0x112   : > { %v273_v43 = vrot.slane %v272_v41, 2  ;;  %v279_v44 = vadd.f32 %v278_v42, %v277_v40 }
 0x114   : > { %v274_v45 = vadd.f32 %v273_v43, %v272_v41  ;;  %v280_v46 = vrot.slane %v279_v44, 2 }
 0x116   : > { %v275_v47 = vrot.slane %v274_v45, 1  ;;  %v281_v48 = vadd.f32 %v280_v46, %v279_v44 }
 0x118   : > { %v276_v49 = vadd.f32 %v275_v47, %v274_v45  ;;  %v282_v50 = vrot.slane %v281_v48, 1 }
 0x11a   : > { %430 = vrcp.f32 %v276_v49  ;;  %v283_v51 = vadd.f32 %v282_v50, %v281_v48 }
 0x11c   : > { %432 = vrcp.f32 %v283_v51 }
 0x124   : > { %v431_v52 = vpop.eup %430 }
 0x125   : > { %v286_v53 = vmul.f32 %v431_v52, %v423_v34  ;;  %v288_v54 = vmul.f32 %v431_v52, %v425_v35 }
 0x126   : > { %v433_v55 = vpop.eup %432 }
 0x127   : > { %290 = vst [vmem:[%s181_s21] sm:$0xff] %v286_v53  ;;  %292 = vst [vmem:[%s181_s21 + $0x10] sm:$0xff] %v288_v54  ;;  %v287_v56 = vmul.f32 %v433_v55, %v427_v36  ;;  %v289_v57 = vmul.f32 %v433_v55, %v429_v38 }
 0x129   : > { %291 = vst [vmem:[%s181_s21 + $0x8] sm:$0xff] %v287_v56  ;;  %293 = vst [vmem:[%s181_s21 + $0x18] sm:$0xff] %v289_v57 }
 0x12a PF: > { %s12_s11 = sadd.s32 1, %s456_s11   ;;  %s520_s9 = smov %s452_s10 }
 0x12b   : > { %p9_p5 = scmp.ge.s32.totalorder %s12_s11, 4   ;;  %s521_s10 = smov %s523_s12 }
 0x12d   :  { %11 = sbr.rel (!%p9_p5) target bundleno = 2 (0x2), region = 58 }

</bundles_post_ra>
